<compile_context>
chip_gen: v7x
topology: tpu7x:2x2x1
jax: 0.10.0
libtpu: 0.0.40
codegen_flags: <defaults>
</compile_context>

<pallas_src>
import math

import numpy as np
import jax
import jax.numpy as jnp
from jax import lax
from jax.experimental import pallas as pl
from jax.experimental.pallas import tpu as pltpu


def _rand_select(xs):
    xs_list = list(xs)
    rand_n = np.random.randint(0, len(xs_list), 1)
    return xs_list[rand_n[0]]


def _round_up(x, m):
    return ((x + m - 1) // m) * m


def _lcm(a, b):
    return a * b // math.gcd(a, b)


def _pick_tr(h, w):
    """Output rows per grid step.

    TR*W is a multiple of 256 (fills the 256-wide v6e/v7x MXU, still a
    lane-dense multiple of 128 on v5e) and TR is a multiple of 8.  Falls back
    to 128-multiples when the 256 requirement would blow TR far past H.
    """
    tr256 = _lcm(256 // math.gcd(w, 256), 8)
    tr128 = _lcm(128 // math.gcd(w, 128), 8)
    if tr256 <= max(tr128, _round_up(h, 8)):
        return tr256
    return tr128


def _vmem_capacity_bytes():
    try:
        info = pltpu.get_tpu_info()
        cap = getattr(info, "vmem_capacity_bytes", None)
        if cap:
            return int(cap)
    except Exception:
        pass
    return 64 << 20    # conservative: v7x per-TensorCore VMEM


_WHOLE_VMEM_OK = None


def _whole_array_vmem_supported():
    """One-time probe: can an input be a whole-array VMEM operand (no block
    spec, hence no double buffering) alongside a PrefetchScalarGridSpec?"""
    global _WHOLE_VMEM_OK
    if _WHOLE_VMEM_OK is None:
        def k(s_ref, x_ref, o_ref):
            i = pl.program_id(0)
            row = pl.multiple_of(s_ref[i] * 8, 8)
            o_ref[...] = x_ref[pl.ds(row, 8), :] * 2.0

        try:
            c = pl.pallas_call(
                k,
                out_shape=jax.ShapeDtypeStruct((16, 128), jnp.float32),
                grid_spec=pltpu.PrefetchScalarGridSpec(
                    num_scalar_prefetch=1,
                    grid=(2,),
                    in_specs=[pl.BlockSpec(memory_space=pltpu.MemorySpace.VMEM)],
                    out_specs=pl.BlockSpec((8, 128), lambda i, s: (i, 0)),
                ),
            )
            jax.jit(c).lower(
                jax.ShapeDtypeStruct((2,), jnp.int32),
                jax.ShapeDtypeStruct((16, 128), jnp.float32)).compile()
            _WHOLE_VMEM_OK = True
        except Exception:
            _WHOLE_VMEM_OK = False
    return _WHOLE_VMEM_OK


def _build_rotation_tables(h, w, angle_deg, tr):
    """Host-side O(H*W) build of per-angle interpolation tables.

    Returns:
      hxT : (nblk, W, TR*W) f32  horizontal bilinear weights, pre-transposed
      vmat: (nblk, BV, TR*W) f32 vertical bilinear weights per band slot
      lo  : (nblk,) i32          8-aligned source band start row per block
      hp  : padded height (multiple of TR, hence of 8)
      bv  : band height (multiple of 8, <= hp)
    """
    hp = _round_up(h, tr)
    nblk = hp // tr
    theta = math.radians(float(angle_deg))
    ct, st = math.cos(theta), math.sin(theta)
    cx, cy = (w - 1) * 0.5, (h - 1) * 0.5

    yo = np.arange(hp, dtype=np.float64)[:, None]
    xo = np.arange(w, dtype=np.float64)[None, :]
    src_x = (xo - cx) * ct - (yo - cy) * st + cx
    src_y = (xo - cx) * st + (yo - cy) * ct + cy

    x0 = np.floor(src_x); x1 = x0 + 1.0
    wx1 = src_x - x0;     wx0 = 1.0 - wx1
    y0 = np.floor(src_y); y1 = y0 + 1.0
    wy1 = src_y - y0;     wy0 = 1.0 - wy1

    vx0 = (x0 >= 0) & (x0 <= w - 1)
    vx1 = (x1 >= 0) & (x1 <= w - 1)
    vy0 = (y0 >= 0) & (y0 <= h - 1)
    vy1 = (y1 >= 0) & (y1 <= h - 1)
    real = (np.arange(hp) < h)[:, None]           # padded output rows -> zero weights

    # --- per-block source-row band (8-aligned start, common height BV) -----
    y0c = np.clip(y0, 0, h - 1)
    y1c = np.clip(y1, 0, h - 1)
    lo_rows = np.where(real, y0c, float(h - 1)).min(axis=1)
    hi_rows = np.where(real, y1c, 0.0).max(axis=1)
    lo_blk0 = (np.floor(lo_rows.reshape(nblk, tr).min(axis=1) / 8.0) * 8.0).astype(np.int64)
    hi_blk = hi_rows.reshape(nblk, tr).max(axis=1).astype(np.int64)
    needed = hi_blk - lo_blk0 + 1
    bv = int(min(_round_up(int(needed.max()), 8), hp))
    lo_blk = np.clip(lo_blk0, 0, hp - bv).astype(np.int32)

    # --- horizontal interpolation matrices, already transposed -------------
    hxT = np.zeros((hp, w, w), dtype=np.float32)      # [row, x_src, x_out]
    row_i = np.repeat(np.arange(hp), w)
    col_i = np.tile(np.arange(w), hp)
    for xi, wx, vx in ((x0, wx0, vx0), (x1, wx1, vx1)):
        src = np.clip(xi, 0, w - 1).astype(np.int64).reshape(-1)
        val = (wx * (vx & real)).astype(np.float32).reshape(-1)
        np.add.at(hxT, (row_i, src, col_i), val)
    hxT = hxT.reshape(nblk, tr, w, w).transpose(0, 2, 1, 3).reshape(nblk, w, tr * w)

    # --- vertical weights per band slot -------------------------------------
    vmat = np.zeros((nblk, tr, bv, w), dtype=np.float32)   # [blk, r, d, x_out]
    r_i = np.repeat(np.arange(tr), w)
    c_i = np.tile(np.arange(w), tr)
    for blk in range(nblk):
        lo = int(lo_blk[blk])
        sl = slice(blk * tr, blk * tr + tr)
        for yi, wy, vy in ((y0, wy0, vy0), (y1, wy1, vy1)):
            dd = yi[sl].astype(np.int64) - lo
            val = (wy[sl] * (vy[sl] & real[sl])).astype(np.float32)
            ok = (dd >= 0) & (dd < bv)
            assert np.all(ok | (val == 0.0)), "band window does not cover a valid tap"
            np.add.at(vmat[blk],
                      (r_i, np.clip(dd, 0, bv - 1).reshape(-1), c_i),
                      (val * ok).reshape(-1))
    vmat = vmat.transpose(0, 2, 1, 3).reshape(nblk, bv, tr * w)

    return hxT, vmat, lo_blk, hp, bv


def _make_rotate_fn(shape, dtype, angle_deg):
    """Build (once per (angle, shape, dtype)) the Pallas rotation callable."""
    b, c, h, w = shape
    dt = np.dtype(dtype)
    bc = b * c
    bcp = _round_up(max(bc, 1), 8)

    tr = _pick_tr(h, w)
    hxT, vmat, lo_blk, hp, bv = _build_rotation_tables(h, w, angle_deg, tr)
    nblk = hp // tr
    trw = tr * w

    hxT_dev = jnp.asarray(hxT, dtype=jnp.bfloat16)    # MXU weights streamed in bf16
    v_dev = jnp.asarray(vmat, dtype=jnp.float32)      # VPU combine stays f32 (v5e-safe)
    lo_dev = jnp.asarray(lo_blk, dtype=jnp.int32)

    # ---- band chunking: bound the live f32 matmul intermediate ------------
    w_lanes = _round_up(w, 128)                       # VMEM lane padding of rows
    budget = 8 << 20
    cb = 8
    d = bv
    while d >= 8:
        if bv % d == 0 and bcp * d * (trw * 4 + w_lanes * 2) <= budget:
            cb = d
            break
        d -= 8
    n_chunks = bv // cb

    is_int = np.issubdtype(dt, np.integer)
    if is_int:
        int_lo, int_hi = float(np.iinfo(dt).min), float(np.iinfo(dt).max)

    def kernel(lo_ref, hx_ref, v_ref, img_ref, out_ref):
        i = pl.program_id(0)
        lo = lo_ref[i]                        # 8-aligned source band start row
        hx = hx_ref[...]                      # (w, trw) bf16

        def chunk(ci, acc):
            row = pl.multiple_of(lo + ci * cb, 8)
            band = img_ref[:, pl.ds(row, cb), :]               # (bcp, cb, w) bf16
            band = band.reshape(bcp * cb, w)
            part = jnp.dot(band, hx, preferred_element_type=jnp.float32)
            part = part.reshape(bcp, cb, trw)
            vstart = ci * cb
            if not isinstance(vstart, int):
                vstart = pl.multiple_of(vstart, 8)
            vblk = v_ref[pl.ds(vstart, cb), :]                 # (cb, trw) f32
            return acc + jnp.sum(part * vblk[None, :, :], axis=1)

        acc0 = jnp.zeros((bcp, trw), jnp.float32)
        if n_chunks == 1:
            acc = chunk(0, acc0)
        else:
            acc = lax.fori_loop(0, n_chunks, chunk, acc0, unroll=(n_chunks <= 4))

        if is_int:
            acc = jnp.clip(jnp.round(acc), int_lo, int_hi)
        out_ref[...] = acc.astype(out_ref.dtype)

    # ---- cost / compiler params --------------------------------------------
    flops = 2 * nblk * (bcp * bv) * w * trw + 3 * nblk * bcp * bv * trw
    bytes_accessed = (hxT_dev.size * 2 + v_dev.size * 4
                      + bcp * hp * w * 2 + bcp * hp * w * dt.itemsize)
    cost = pl.CostEstimate(flops=int(flops), transcendentals=0,
                           bytes_accessed=int(bytes_accessed))

    use_vmem_space = _whole_array_vmem_supported()
    img_copies = 1 if use_vmem_space else 2
    vmem_est = (img_copies * bcp * hp * w_lanes * 2    # resident bf16 image
                + 2 * _round_up(w, 8) * trw * 2        # HxT blocks (bf16, 2 bufs)
                + 2 * bv * trw * 4                     # V blocks (f32, 2 bufs)
                + 2 * bcp * trw * dt.itemsize          # output blocks
                + bcp * cb * (w_lanes * 2 + trw * 4)   # live band chunk + matmul out
                + 2 * bcp * trw * 4)                   # f32 accumulator + headroom
    cp = dict(dimension_semantics=("parallel",))
    if vmem_est > 12 * (1 << 20):
        cap = _vmem_capacity_bytes()
        cp["vmem_limit_bytes"] = int(min(max(int(1.5 * vmem_est), 32 << 20),
                                         int(0.85 * cap)))

    def build_call(resident_in_vmem_space):
        if resident_in_vmem_space:
            # Whole-array VMEM operand: brought in once, no double buffering.
            img_spec = pl.BlockSpec(memory_space=pltpu.MemorySpace.VMEM)
        else:
            img_spec = pl.BlockSpec((bcp, hp, w), lambda i, lo: (0, 0, 0))
        return pl.pallas_call(
            kernel,
            out_shape=jax.ShapeDtypeStruct((bcp, hp * w), dt),
            grid_spec=pltpu.PrefetchScalarGridSpec(
                num_scalar_prefetch=1,
                grid=(nblk,),
                in_specs=[
                    pl.BlockSpec((None, w, trw), lambda i, lo: (i, 0, 0)),   # HxT
                    pl.BlockSpec((None, bv, trw), lambda i, lo: (i, 0, 0)),  # V
                    img_spec,                                                # image
                ],
                out_specs=pl.BlockSpec((bcp, trw), lambda i, lo: (0, i)),
            ),
            compiler_params=pltpu.CompilerParams(**cp),
            cost_estimate=cost,
        )

    call = build_call(use_vmem_space)
    needs_pad = (bcp != bc) or (hp != h)

    def rotate(img, lo_d, hx_d, v_d):
        x = img.reshape(bc, h, w).astype(jnp.bfloat16)     # cast once, outside kernel
        if needs_pad:
            x = jnp.pad(x, ((0, bcp - bc), (0, hp - h), (0, 0)))
        out = call(lo_d, hx_d, v_d, x)                     # (bcp, hp*w)
        out = out.reshape(bcp, hp, w)
        if needs_pad:
            out = out[:bc, :h, :]
        return out.reshape(b, c, h, w)

    jit_rotate = jax.jit(rotate)
    return lambda img: jit_rotate(img, lo_dev, hxT_dev, v_dev)


class RandomRotatePallas:
    """Pallas equivalent of the PyTorch RandomRotate module (bilinear, zero fill)."""

    def __init__(self, angles):
        self.angles = list(angles)
        self.last_angle = None
        self._fns = {}

    def prepare(self, shape, dtype):
        """Pre-build and cache tables + kernels for every angle."""
        for a in self.angles:
            self._get_fn(float(a), tuple(int(s) for s in shape), np.dtype(dtype))

    def _get_fn(self, angle, shape, dtype):
        key = (float(angle), tuple(shape), np.dtype(dtype).str)
        if key not in self._fns:
            self._fns[key] = _make_rotate_fn(shape, dtype, float(angle))
        return self._fns[key]

    def __call__(self, img):
        # Angle selection stays on the host with global numpy RNG, exactly like
        # the PyTorch module.  TODO(synk): host-side RNG has no Pallas analog.
        angle = float(_rand_select(self.angles))
        self.last_angle = angle        # recorded so tests can build a reference
        fn = self._get_fn(angle, tuple(int(s) for s in img.shape), np.dtype(img.dtype))
        return fn(img)


def _reference_rotate(img, angle_deg):
    """Pure-numpy bilinear center rotation with zero fill (torchvision tensor path)."""
    b, c, h, w = img.shape
    theta = math.radians(float(angle_deg))
    ct, st = math.cos(theta), math.sin(theta)
    cx, cy = (w - 1) * 0.5, (h - 1) * 0.5
    yo, xo = np.meshgrid(np.arange(h), np.arange(w), indexing="ij")
    sx = (xo - cx) * ct - (yo - cy) * st + cx
    sy = (xo - cx) * st + (yo - cy) * ct + cy
    x0 = np.floor(sx).astype(np.int64)
    y0 = np.floor(sy).astype(np.int64)
    out = np.zeros((b, c, h, w), dtype=np.float64)
    for dy in (0, 1):
        for dx in (0, 1):
            xs = x0 + dx
            ys = y0 + dy
            wgt = (1.0 - np.abs(sx - xs)) * (1.0 - np.abs(sy - ys))
            valid = (xs >= 0) & (xs < w) & (ys >= 0) & (ys < h)
            xc = np.clip(xs, 0, w - 1)
            yc = np.clip(ys, 0, h - 1)
            out += (wgt * valid)[None, None] * img[:, :, yc, xc]
    return out


if __name__ == "__main__":
    np.random.seed(0)
    key = jax.random.PRNGKey(0)

    B, C, H, W = 2, 4, 16, 16
    img = jax.random.uniform(key, (B, C, H, W), dtype=jnp.float32)

    angles = [-30.0, -15.0, 0.0, 15.0, 30.0]
    module = RandomRotatePallas(angles)
    module.prepare((B, C, H, W), jnp.float32)   # per-angle tables cached up front

    out = jax.block_until_ready(module(img))
    angle = module.last_angle                   # angle actually used by the module

    ref = _reference_rotate(np.asarray(img, dtype=np.float64), angle)
    # bf16 interpolation weights / image taps -> ~1e-2 accuracy, hence loose tol.
    np.testing.assert_allclose(np.asarray(out, dtype=np.float64), ref,
                               rtol=2e-2, atol=2e-2)
    print("KERNEL_OK")
</pallas_src>

<mosaic_0001>
module attributes {stable_mosaic.version = 11 : i64} {
  func.func @kernel(%arg0: i32, %arg1: memref<1xi32, #tpu.memory_space<smem>>, %arg2: memref<1x16x256xbf16, #tpu.memory_space<vmem>>, %arg3: memref<1x16x256xf32, #tpu.memory_space<vmem>>, %arg4: memref<8x16x16xbf16, #tpu.memory_space<vmem>>, %arg5: memref<8x256xf32, #tpu.memory_space<vmem>>) attributes {dimension_semantics = [#tpu.dimension_semantics<parallel>], iteration_bounds = array<i64: 1>, scalar_prefetch = 1 : i64, scratch_operands = 0 : i64, tpu.core_type = #tpu.core_type<tc>, window_params = [{transform_indices = @transform_0, window_bounds = array<i64: 1, 16, 256>}, {transform_indices = @transform_1, window_bounds = array<i64: 1, 16, 256>}, {pipeline_mode = #tpu.pipeline_mode<synchronous>, transform_indices = @transform_2, window_bounds = array<i64: 8, 16, 16>}, {transform_indices = @transform_3, window_bounds = array<i64: 8, 256>}]} {
    %0 = arith.index_cast %arg0 : i32 to index
    %1 = memref.load %arg1[%0] : memref<1xi32, #tpu.memory_space<smem>>
    %c0 = arith.constant 0 : index
    %c0_0 = arith.constant 0 : index
    %c0_1 = arith.constant 0 : index
    %2 = vector.load %arg2[%c0, %c0_0, %c0_1] : memref<1x16x256xbf16, #tpu.memory_space<vmem>>, vector<1x16x256xbf16>
    %3 = vector.shape_cast %2 : vector<1x16x256xbf16> to vector<16x256xbf16>
    %cst = arith.constant 0.000000e+00 : f32
    %4 = vector.broadcast %cst : f32 to vector<8x256xf32>
    %c0_i32 = arith.constant 0 : i32
    %5 = arith.addi %1, %c0_i32 : i32
    %6 = tpu.assume_multiple %5, 8 : i32
    %c0_2 = arith.constant 0 : index
    %7 = arith.index_cast %6 : i32 to index
    %c0_3 = arith.constant 0 : index
    %8 = vector.load %arg4[%c0_2, %7, %c0_3] : memref<8x16x16xbf16, #tpu.memory_space<vmem>>, vector<8x16x16xbf16>
    %9 = vector.shape_cast %8 : vector<8x16x16xbf16> to vector<128x16xbf16>
    %cst_4 = arith.constant dense<0.000000e+00> : vector<128x256xf32>
    %10 = tpu.matmul %9, %3, %cst_4 {dimension_numbers = #tpu.dot_dimension_numbers<[1], [0], [0], [1], [0, 0, 1, 1], [], []>} : vector<128x16xbf16>, vector<16x256xbf16>, vector<128x256xf32> -> vector<128x256xf32>
    %11 = vector.shape_cast %10 : vector<128x256xf32> to vector<8x16x256xf32>
    %c0_5 = arith.constant 0 : index
    %c0_6 = arith.constant 0 : index
    %c0_7 = arith.constant 0 : index
    %12 = vector.load %arg3[%c0_5, %c0_6, %c0_7] : memref<1x16x256xf32, #tpu.memory_space<vmem>>, vector<1x16x256xf32>
    %13 = vector.shape_cast %12 : vector<1x16x256xf32> to vector<16x256xf32>
    %14 = vector.shape_cast %13 : vector<16x256xf32> to vector<1x16x256xf32>
    %15 = vector.broadcast %14 : vector<1x16x256xf32> to vector<8x16x256xf32>
    %16 = arith.mulf %11, %15 : vector<8x16x256xf32>
    %cst_8 = arith.constant dense<0.000000e+00> : vector<8x256xf32>
    %17 = vector.multi_reduction <add>, %16, %cst_8 [1] : vector<8x16x256xf32> to vector<8x256xf32>
    %18 = arith.addf %4, %17 : vector<8x256xf32>
    %c0_9 = arith.constant 0 : index
    %c0_10 = arith.constant 0 : index
    %19 = vector.load %arg5[%c0_9, %c0_10] : memref<8x256xf32, #tpu.memory_space<vmem>>, vector<8x256xf32>
    tpu.vector_store %arg5[%c0_9, %c0_10], %18 {strides = array<i32>} : memref<8x256xf32, #tpu.memory_space<vmem>>, vector<8x256xf32>,
    return
  }
  func.func @transform_0(%arg0: i32, %arg1: memref<1xi32, #tpu.memory_space<smem>>) -> (i32, i32, i32) {
    %c0_i32 = arith.constant 0 : i32
    %c0_i32_0 = arith.constant 0 : i32
    %c0_i32_1 = arith.constant 0 : i32
    return %arg0, %c0_i32, %c0_i32_0 : i32, i32, i32
  }
  func.func @transform_1(%arg0: i32, %arg1: memref<1xi32, #tpu.memory_space<smem>>) -> (i32, i32, i32) {
    %c0_i32 = arith.constant 0 : i32
    %c0_i32_0 = arith.constant 0 : i32
    %c0_i32_1 = arith.constant 0 : i32
    return %arg0, %c0_i32, %c0_i32_0 : i32, i32, i32
  }
  func.func @transform_2(%arg0: i32, %arg1: memref<1xi32, #tpu.memory_space<smem>>) -> (i32, i32, i32) {
    %c0_i32 = arith.constant 0 : i32
    %c0_i32_0 = arith.constant 0 : i32
    %c0_i32_1 = arith.constant 0 : i32
    %c0_i32_2 = arith.constant 0 : i32
    return %c0_i32, %c0_i32_0, %c0_i32_1 : i32, i32, i32
  }
  func.func @transform_3(%arg0: i32, %arg1: memref<1xi32, #tpu.memory_space<smem>>) -> (i32, i32) {
    %c0_i32 = arith.constant 0 : i32
    %c0_i32_0 = arith.constant 0 : i32
    return %c0_i32, %arg0 : i32, i32
  }
}

</mosaic_0001>

<bundles_post_ra>
// kernel: rotate.1
= control target key start
LH: loop header
LB: loop body
LE: loop exit
PB: predicated region body
PF: predicated region fallthrough
CT: control target
= control target key end

     0   :  { %v472_v1 = vmov 0   ;;  %vm90_vm0 = vcmask 130048   ;;  %vm408_vm1 = vcmask 1041409   ;;  %vm410_vm2 = vcmask 1042434   ;;  %s602_s1 = inlined_call_operand.vmem [shape: bf16[1,16,256], index: 1, kind: input, shape index: {}]   ;;  %s603_s0 = inlined_call_operand.<no memory space> [shape: s32[1], index: 0, kind: input, shape index: {}]   ;;  %s604_s3 = inlined_call_operand.vmem [shape: bf16[8,16,16], index: 3, kind: input, shape index: {}]   ;;  %s605_s2 = inlined_call_operand.vmem [shape: f32[1,16,256], index: 2, kind: input, shape index: {}]   ;;  %s606_s4 = inlined_call_operand.vmem [shape: f32[8,256], index: 4, kind: output, shape index: {}]  }
   0x1   :  { %v461_v0 = vld [vmem:[%s602_s1 + $0x4] ss:$8 sps:$4 sm:$0xff]   ;;  %147 = vmatprep.mubr.bf16.mxu0 %v472_v1  ;;  %187 = vmatprep.mubr.bf16.mxu1 %v472_v1  ;;  %s20_s19 = sshra.s32 %s603_s0, 3  ;;  %v463_v2 = vld [vmem:[%s602_s1] ss:$8 sps:$4 sm:$0xff]   ;;  %v526_v14 = vld [vmem:[%s605_s2 + $0x10] sm:$0xff] }
   0x2   :  { %s439_s22 = sshll.u32 %s20_s19, 2  ;;  %115 = vmatprep.subr.bf16.mxu0 %v461_v0  ;;  %458 = vmatprep.subr.bf16.mxu1 %v461_v0  ;;  %v521_v12 = vld [vmem:[%s605_s2] sm:$0xff]  ;;  %v532_v17 = vld [vmem:[%s605_s2 + $0x8] sm:$0xff]  ;;  %v537_v19 = vld [vmem:[%s605_s2 + $0x18] sm:$0xff]  ;;  %vm412_vm3 = vcmask 1043459   ;;  %vm414_vm4 = vcmask 1044484  }
   0x3   :  { %s23_s25 = scalar_lea.vmem %s604_s3, %s439_s22  ;;  %116 = vmatpush1.bf16.msra.mxu0 %v463_v2  ;;  %459 = vmatpush1.bf16.msra.mxu1 %v463_v2  ;;  %vm416_vm5 = vcmask 1045509   ;;  %vm418_vm6 = vcmask 1046534   ;;  %vm420_vm7 = vcmask 1047559  }
   0x4   :  { %v464_v3 = vld [vmem:[%s23_s25] sm:$0xff]   ;;  %v466_v5 = vld [vmem:[%s23_s25 + $0x8] sm:$0xff]   ;;  %v468_v7 = vld [vmem:[%s23_s25 + $0x10] sm:$0xff]  }
   0x5   :  { %v465_v4 = vld [vmem:[%s23_s25 + $0x20] sm:$0xff]   ;;  %v467_v6 = vld [vmem:[%s23_s25 + $0x28] sm:$0xff]   ;;  %v469_v8 = vld [vmem:[%s23_s25 + $0x30] sm:$0xff]  }
   0x6   :  { %450 = vmatmul.mubr.msk.bf16.vlgmr.msra.gmra.mrb[0].mxu0 %vm90_vm0, %v464_v3  ;;  %454 = vmatmul.mubr.msk.bf16.vlgmr.msra.gmra.mrb[0].mxu1 %vm90_vm0, %v465_v4  ;;  %v470_v9 = vld [vmem:[%s23_s25 + $0x18] sm:$0xff]  }
   0x7   :  { %157 = vmatprep.mubr.bf16.mxu0 %v472_v1  ;;  %197 = vmatprep.mubr.bf16.mxu1 %v472_v1  ;;  %v471_v10 = vld [vmem:[%s23_s25 + $0x38] sm:$0xff]  }
   0xe   :  { %451 = vmatmul.mubr.msk.bf16.gmra.mrb[4].mxu0 %vm90_vm0, %v466_v5  ;;  %455 = vmatmul.mubr.msk.bf16.gmra.mrb[4].mxu1 %vm90_vm0, %v467_v6 }
   0xf   :  { %167 = vmatprep.mubr.bf16.mxu0 %v472_v1  ;;  %207 = vmatprep.mubr.bf16.mxu1 %v472_v1 }
  0x16   :  { %452 = vmatmul.mubr.msk.bf16.gmra.mrb[8].mxu0 %vm90_vm0, %v468_v7  ;;  %456 = vmatmul.mubr.msk.bf16.gmra.mrb[8].mxu1 %vm90_vm0, %v469_v8 }
  0x17   :  { %177 = vmatprep.mubr.bf16.mxu0 %v472_v1  ;;  %217 = vmatprep.mubr.bf16.mxu1 %v472_v1 }
  0x1e   :  { %453 = vmatmul.mubr.msk.bf16.gmra.mrb[12].mxu0 %vm90_vm0, %v470_v9  ;;  %457 = vmatmul.mubr.msk.bf16.gmra.mrb[12].mxu1 %vm90_vm0, %v471_v10 }
  0xd9   :  { %v149_v11 = vpop.f32.mrb[0].mxu0  ;;  %v189_v13 = vpop.f32.mrb[0].mxu1 }
  0xda   :  { %v248_v15 = vmul.f32 %v521_v12, %v189_v13  ;;  %v151_v16 = vpop.f32.mrb[1].mxu0  ;;  %v191_v18 = vpop.f32.mrb[1].mxu1  ;;  %v232_v23 = vmul.f32 %v521_v12, %v149_v11 }
  0xdb   :  { %v249_v20 = vmul.f32 %v532_v17, %v191_v18  ;;  %v153_v21 = vpop.f32.mrb[2].mxu0  ;;  %v193_v22 = vpop.f32.mrb[2].mxu1  ;;  %v233_v28 = vmul.f32 %v532_v17, %v151_v16 }
  0xdc   :  { %v234_v24 = vmul.f32 %v526_v14, %v153_v21  ;;  %v250_v25 = vmul.f32 %v526_v14, %v193_v22  ;;  %v155_v26 = vpop.f32.mrb[3].mxu0  ;;  %v195_v27 = vpop.f32.mrb[3].mxu1 }
  0xdd   :  { %v235_v29 = vmul.f32 %v537_v19, %v155_v26  ;;  %v251_v30 = vmul.f32 %v537_v19, %v195_v27 }
  0xde   :  { %v264_v31 = vadd.f32 %v234_v24, %v232_v23  ;;  %v320_v32 = vadd.f32 %v250_v25, %v248_v15 }
  0xdf   :  { %v271_v33 = vadd.f32 %v235_v29, %v233_v28  ;;  %v327_v34 = vadd.f32 %v251_v30, %v249_v20 }
  0xe0   :  { %v265_v35 = vrot.slane %v264_v31, 4  ;;  %v321_v43 = vrot.slane %v320_v32, 4 }
  0xe1   :  { %v272_v36 = vrot.slane %v271_v33, 4  ;;  %v159_v37 = vpop.f32.mrb[4].mxu0  ;;  %v199_v38 = vpop.f32.mrb[4].mxu1  ;;  %v328_v63 = vrot.slane %v327_v34, 4 }
  0xe2   :  { %v266_v39 = vadd.f32 %v265_v35, %v264_v31  ;;  %v252_v40 = vmul.f32 %v521_v12, %v199_v38  ;;  %v161_v41 = vpop.f32.mrb[5].mxu0  ;;  %v201_v42 = vpop.f32.mrb[5].mxu1  ;;  %v236_v48 = vmul.f32 %v521_v12, %v159_v37  ;;  %v322_v62 = vadd.f32 %v321_v43, %v320_v32 }
  0xe3   :  { %v273_v44 = vadd.f32 %v272_v36, %v271_v33  ;;  %v253_v45 = vmul.f32 %v532_v17, %v201_v42  ;;  %v163_v46 = vpop.f32.mrb[6].mxu0  ;;  %v203_v47 = vpop.f32.mrb[6].mxu1  ;;  %v237_v49 = vmul.f32 %v532_v17, %v161_v41  ;;  %v556_v15 = vadd.f32 %v328_v63, %v327_v34 }
  0xe4   :  { %v238_v50 = vmul.f32 %v526_v14, %v163_v46  ;;  %v254_v51 = vmul.f32 %v526_v14, %v203_v47  ;;  %v165_v52 = vpop.f32.mrb[7].mxu0  ;;  %v205_v53 = vpop.f32.mrb[7].mxu1  ;;  %v267_v54 = vrot.slane %v266_v39, 2  ;;  %v323_v13 = vrot.slane %v322_v62, 2 }
  0xe5   :  { %v274_v55 = vrot.slane %v273_v44, 2  ;;  %v239_v56 = vmul.f32 %v537_v19, %v165_v52  ;;  %v255_v57 = vmul.f32 %v537_v19, %v205_v53 }
  0xe6   :  { %v278_v58 = vadd.f32 %v238_v50, %v236_v48  ;;  %v334_v59 = vadd.f32 %v254_v51, %v252_v40  ;;  %v268_v1 = vadd.f32 %v267_v54, %v266_v39  ;;  %v330_v51 = vrot.slane %v556_v15, 2 }
  0xe7   :  { %v285_v60 = vadd.f32 %v239_v56, %v237_v49  ;;  %v554_v61 = vadd.f32 %v255_v57, %v253_v45  ;;  %v275_v2 = vadd.f32 %v274_v55, %v273_v44  ;;  %v568_v56 = vadd.f32 %v323_v13, %v322_v62 }
  0xe8   :  { %v279_v0 = vrot.slane %v278_v58, 4  ;;  %v269_v22 = vrot.slane %v268_v1, 1  ;;  %v335_v35 = vrot.slane %v334_v59, 4 }
  0xe9   :  { %v286_v3 = vrot.slane %v285_v60, 4  ;;  %v169_v4 = vpop.f32.mrb[8].mxu0  ;;  %v209_v5 = vpop.f32.mrb[8].mxu1  ;;  %v276_v23 = vrot.slane %v275_v2, 1  ;;  %v342_v39 = vrot.slane %v554_v61, 4 }
  0xea   :  { %v280_v6 = vadd.f32 %v279_v0, %v278_v58  ;;  %v171_v7 = vpop.f32.mrb[9].mxu0  ;;  %v211_v8 = vpop.f32.mrb[9].mxu1  ;;  %v256_v18 = vmul.f32 %v521_v12, %v209_v5  ;;  %v240_v27 = vmul.f32 %v521_v12, %v169_v4  ;;  %v270_v44 = vadd.f32 %v269_v22, %v268_v1 }
  0xeb   :  { %v287_v9 = vadd.f32 %v286_v3, %v285_v60  ;;  %v173_v10 = vpop.f32.mrb[10].mxu0  ;;  %v213_v11 = vpop.f32.mrb[10].mxu1  ;;  %v257_v25 = vmul.f32 %v532_v17, %v211_v8  ;;  %v241_v31 = vmul.f32 %v532_v17, %v171_v7  ;;  %v277_v50 = vadd.f32 %v276_v23, %v275_v2 }
  0xec   :  { %v281_v16 = vrot.slane %v280_v6, 2  ;;  %v175_v20 = vpop.f32.mrb[11].mxu0  ;;  %v215_v21 = vpop.f32.mrb[11].mxu1  ;;  %v242_v28 = vmul.f32 %v526_v14, %v173_v10  ;;  %v258_v29 = vmul.f32 %v526_v14, %v213_v11  ;;  %v336_v58 = vadd.f32 %v335_v35, %v334_v59 }
  0xed   :  { %v288_v24 = vrot.slane %v287_v9, 2  ;;  %v243_v32 = vmul.f32 %v537_v19, %v175_v20  ;;  %v259_v33 = vmul.f32 %v537_v19, %v215_v21  ;;  %v343_v5 = vadd.f32 %v342_v39, %v554_v61 }
  0xee   :  { %v282_v26 = vadd.f32 %v281_v16, %v280_v6  ;;  %v292_v36 = vadd.f32 %v242_v28, %v240_v27  ;;  %v348_v37 = vadd.f32 %v258_v29, %v256_v18  ;;  %v337_v23 = vrot.slane %v336_v58, 2 }
  0xef   :  { %v289_v30 = vadd.f32 %v288_v24, %v287_v9  ;;  %v299_v40 = vadd.f32 %v243_v32, %v241_v31  ;;  %v355_v41 = vadd.f32 %v259_v33, %v257_v25  ;;  %v331_v35 = vadd.f32 %v330_v51, %v556_v15 }
  0xf0   :  { %v283_v34 = vrot.slane %v282_v26, 1  ;;  %v293_v46 = vrot.slane %v292_v36, 4  ;;  %v349_v47 = vrot.slane %v348_v37, 4  ;;  %v338_v39 = vadd.f32 %v337_v23, %v336_v58 }
  0xf1   :  { %v290_v38 = vrot.slane %v289_v30, 1  ;;  %v179_v42 = vpop.f32.mrb[12].mxu0  ;;  %v219_v43 = vpop.f32.mrb[12].mxu1  ;;  %v300_v53 = vrot.slane %v299_v40, 4  ;;  %v356_v4 = vrot.slane %v355_v41, 4  ;;  %v332_v51 = vrot.slane %v331_v35, 1 }
  0xf2   :  { %v284_v45 = vadd.f32 %v283_v34, %v282_v26  ;;  %v181_v48 = vpop.f32.mrb[13].mxu0  ;;  %v221_v49 = vpop.f32.mrb[13].mxu1  ;;  %v294_v60 = vadd.f32 %v293_v46, %v292_v36  ;;  %v260_v2 = vmul.f32 %v521_v12, %v219_v43  ;;  %v350_v7 = vadd.f32 %v349_v47, %v348_v37 }
  0xf3   :  { %v291_v52 = vadd.f32 %v290_v38, %v289_v30  ;;  %v183_v54 = vpop.f32.mrb[14].mxu0  ;;  %v223_v55 = vpop.f32.mrb[14].mxu1  ;;  %v301_v3 = vadd.f32 %v300_v53, %v299_v40  ;;  %v261_v8 = vmul.f32 %v532_v17, %v221_v49  ;;  %v244_v9 = vmul.f32 %v521_v12, %v179_v42 }
  0xf4   :  { %v409_v57 = vsel %vm408_vm1, %v284_v45, %v270_v44  ;;  %v185_v63 = vpop.f32.mrb[15].mxu0  ;;  %v225_v0 = vpop.f32.mrb[15].mxu1  ;;  %v295_v6 = vrot.slane %v294_v60, 2  ;;  %v246_v59 = vmul.f32 %v526_v14, %v183_v54  ;;  %v262_v10 = vmul.f32 %v526_v14, %v223_v55 }
  0xf5   :  { %v422_v1 = vsel %vm408_vm1, %v291_v52, %v277_v50  ;;  %v302_v62 = vrot.slane %v301_v3, 2  ;;  %v245_v13 = vmul.f32 %v532_v17, %v181_v48  ;;  %v247_v16 = vmul.f32 %v537_v19, %v185_v63 }
  0xf6   :  { %v296_v11 = vadd.f32 %v295_v6, %v294_v60  ;;  %v263_v18 = vmul.f32 %v537_v19, %v225_v0  ;;  %v357_v61 = vadd.f32 %v356_v4, %v355_v41  ;;  %v306_v21 = vadd.f32 %v246_v59, %v244_v9 }
  0xf7   :  { %v303_v20 = vadd.f32 %v302_v62, %v301_v3  ;;  %v362_v22 = vadd.f32 %v262_v10, %v260_v2  ;;  %v313_v25 = vadd.f32 %v247_v16, %v245_v13  ;;  %v344_v12 = vrot.slane %v343_v5, 2 }
  0xf8   :  { %v297_v24 = vrot.slane %v296_v11, 1  ;;  %v369_v26 = vadd.f32 %v263_v18, %v261_v8  ;;  %v307_v28 = vrot.slane %v306_v21, 4  ;;  %v351_v30 = vrot.slane %v350_v7, 2 }
  0xf9   :  { %v304_v27 = vrot.slane %v303_v20, 1  ;;  %v363_v29 = vrot.slane %v362_v22, 4  ;;  %v314_v31 = vrot.slane %v313_v25, 4  ;;  %v358_v33 = vrot.slane %v357_v61, 2 }
  0xfa   :  { %v298_v14 = vadd.f32 %v297_v24, %v296_v11  ;;  %v370_v17 = vrot.slane %v369_v26, 4  ;;  %v308_v34 = vadd.f32 %v307_v28, %v306_v21  ;;  %v345_v43 = vadd.f32 %v344_v12, %v343_v5 }
  0xfb   :  { %v305_v32 = vadd.f32 %v304_v27, %v303_v20  ;;  %v364_v19 = vadd.f32 %v363_v29, %v362_v22  ;;  %v315_v37 = vadd.f32 %v314_v31, %v313_v25  ;;  %v352_v44 = vadd.f32 %v351_v30, %v350_v7 }
  0xfc   :  { %v411_v36 = vsel %vm410_vm2, %v298_v14, %v409_v57  ;;  %v371_v38 = vadd.f32 %v370_v17, %v369_v26  ;;  %v309_v41 = vrot.slane %v308_v34, 2  ;;  %v359_v47 = vadd.f32 %v358_v33, %v357_v61 }
  0xfd   :  { %v423_v40 = vsel %vm410_vm2, %v305_v32, %v422_v1  ;;  %v365_v42 = vrot.slane %v364_v19, 2  ;;  %v316_v45 = vrot.slane %v315_v37, 2  ;;  %v325_v50 = vrot.slane %v568_v56, 1 }
  0xfe   :  { %v372_v46 = vrot.slane %v371_v38, 2  ;;  %v310_v48 = vadd.f32 %v309_v41, %v308_v34  ;;  %v339_v53 = vrot.slane %v338_v39, 1  ;;  %v346_v55 = vrot.slane %v345_v43, 1 }
  0xff   :  { %v366_v49 = vadd.f32 %v365_v42, %v364_v19  ;;  %v317_v52 = vadd.f32 %v316_v45, %v315_v37  ;;  %v353_v57 = vrot.slane %v352_v44, 1  ;;  %v360_v60 = vrot.slane %v359_v47, 1 }
 0x100   :  { %v373_v15 = vadd.f32 %v372_v46, %v371_v38  ;;  %v311_v54 = vrot.slane %v310_v48, 1  ;;  %v326_v1 = vadd.f32 %v325_v50, %v568_v56  ;;  %v333_v2 = vadd.f32 %v332_v51, %v331_v35 }
 0x101   :  { %v318_v58 = vrot.slane %v317_v52, 1  ;;  %v367_v0 = vrot.slane %v366_v49, 1  ;;  %v340_v5 = vadd.f32 %v339_v53, %v338_v39  ;;  %v347_v7 = vadd.f32 %v346_v55, %v345_v43 }
 0x102   :  { %v312_v63 = vadd.f32 %v311_v54, %v310_v48  ;;  %v374_v4 = vrot.slane %v373_v15, 1  ;;  %v354_v8 = vadd.f32 %v353_v57, %v352_v44  ;;  %v361_v59 = vadd.f32 %v360_v60, %v359_v47 }
 0x103   :  { %v319_v3 = vadd.f32 %v318_v58, %v317_v52  ;;  %v368_v10 = vadd.f32 %v367_v0, %v366_v49 }
 0x104   :  { %v413_v6 = vsel %vm412_vm3, %v312_v63, %v411_v36  ;;  %v375_v16 = vadd.f32 %v374_v4, %v373_v15 }
 0x105   :  { %v415_v62 = vsel %vm414_vm4, %v326_v1, %v413_v6  ;;  %v424_v9 = vsel %vm412_vm3, %v319_v3, %v423_v40 }
 0x106   :  { %v417_v11 = vsel %vm416_vm5, %v340_v5, %v415_v62  ;;  %v425_v56 = vsel %vm414_vm4, %v333_v2, %v424_v9 }
 0x107   :  { %v419_v13 = vsel %vm418_vm6, %v354_v8, %v417_v11  ;;  %v426_v18 = vsel %vm416_vm5, %v347_v7, %v425_v56 }
 0x108   :  { %v421_v20 = vsel %vm420_vm7, %v368_v10, %v419_v13  ;;  %v427_v61 = vsel %vm418_vm6, %v361_v59, %v426_v18 }
 0x109   :  { %431 = vst [vmem:[%s606_s4] sm:$0xff] %v421_v20  ;;  %v428_v21 = vsel %vm420_vm7, %v375_v16, %v427_v61 }
 0x10a   :  { %432 = vst [vmem:[%s606_s4 + $0x8] sm:$0xff] %v428_v21 }

</bundles_post_ra>
